<compile_context>
chip_gen: v7x
topology: tpu7x:2x2x1
jax: 0.10.0
libtpu: 0.0.40
codegen_flags: <defaults>
</compile_context>

<pallas_src>
import functools

import jax
import jax.numpy as jnp
import numpy as np
from jax import lax
from jax.experimental import pallas as pl
from jax.experimental.pallas import tpu as pltpu


# ----------------------------------------------------------------------------
# Fused DenseBlock kernel: one batch tile (NB packed batch elements) per step.
# ----------------------------------------------------------------------------
def _dense_block_kernel(x_ref, chan_ref, w_ref, bias_ref, o_ref, feat_ref, *,
                        in_c, in_out, K, pad_left, NB, Lp):
    lanes = NB * Lp
    L = Lp - (K - 1)

    # Mask that is 1.0 on the L valid columns of each per-batch segment and
    # 0.0 on the K-1 halo columns (computed once per grid step; tiny).
    lane_idx = lax.broadcasted_iota(jnp.int32, (1, lanes), 1)
    pos = lane_idx % Lp
    valid_f = jnp.logical_and(pos >= pad_left, pos < pad_left + L)
    valid_f = valid_f.astype(jnp.float32)

    # Load x into the channel-stacked feature scratch (rows [0, in_c)).
    feat_ref[0:in_c, :] = x_ref[...]

    for s in range(4):                        # statically unrolled: 4 stages
        C_s = in_c + s * in_out

        # Packed per-channel params: [s1, b1, s2*dw_w, dw_b*s2 + b2].
        cp = chan_ref[s, 0:C_s, :]            # (C_s, 4)
        s1, b1 = cp[:, 0:1], cp[:, 1:2]
        s2, b2 = cp[:, 2:3], cp[:, 3:4]

        h = feat_ref[0:C_s, :]                # (C_s, lanes)
        h = jnp.maximum(h * s1 + b1, 0.0)     # BN1 (folded) + ReLU
        h = jnp.maximum(h * s2 + b2, 0.0)     # dw-1x1 conv + BN2 (folded) + ReLU
        h = h * valid_f                       # zero the per-batch halo columns

        # im2col: K lane-shifted copies stacked along the channel axis.
        taps = []
        for k in range(K):
            d = k - pad_left                  # tap offset in [-pad_left, +pad_right]
            if d > 0:
                z = jnp.zeros((C_s, d), jnp.float32)
                taps.append(jnp.concatenate([h[:, d:], z], axis=1))
            elif d < 0:
                z = jnp.zeros((C_s, -d), jnp.float32)
                taps.append(jnp.concatenate([z, h[:, :lanes + d]], axis=1))
            else:
                taps.append(h)
        him = jnp.concatenate(taps, axis=0)   # (K*C_s, lanes)

        # Single MXU matmul per stage: (O, K*C_s) x (K*C_s, lanes).
        W = w_ref[s, :, 0:K * C_s]            # (O, K*C_s)
        y = jnp.dot(W, him, preferred_element_type=jnp.float32) + bias_ref[s]

        if s < 3:
            # Append x_{s+1} to the channel-stacked feature buffer.
            feat_ref[C_s:C_s + in_out, :] = y
        else:
            o_ref[...] = y                    # x4 (halo lanes sliced off on host)


# ----------------------------------------------------------------------------
# Host wrapper: parameter folding/packing + batch/lane layout + pallas_call.
# ----------------------------------------------------------------------------
def dense_block_forward(x, params):
    """DenseBlock.forward: returns x4 only (matches the PyTorch module)."""
    B, in_c, L = x.shape
    conv_w1 = params["conv1"]["conv_w"]       # (in_out, in_c, K)
    in_out, _, K = conv_w1.shape
    pad_left = (K - 1) // 2                   # PyTorch 'same' for odd K
    pad_right = K - 1 - pad_left
    Lp = L + K - 1                            # per-batch segment incl. halo
    Ctot = in_c + 3 * in_out                  # channels of the widest stage
    eps = 1e-5

    # Pack NB batch elements per grid step so the lane axis approaches >= 128.
    NB = min(B, max(1, -(-128 // Lp)))
    G = -(-B // NB)
    Bpad = G * NB
    lanes = NB * Lp

    # ---- fold + pack parameters (plain-JAX glue, done once per call) ----
    chan_pack = jnp.zeros((4, Ctot, 4), jnp.float32)
    w_pack = jnp.zeros((4, in_out, K * Ctot), jnp.float32)
    bias_pack = jnp.zeros((4, in_out, 1), jnp.float32)
    for s in range(4):
        p = params[f"conv{s + 1}"]
        C_s = in_c + s * in_out
        s1 = p["bn1_gamma"] / jnp.sqrt(p["bn1_var"] + eps)
        b1 = p["bn1_beta"] - p["bn1_mean"] * s1
        s2 = p["bn2_gamma"] / jnp.sqrt(p["bn2_var"] + eps)
        b2 = p["bn2_beta"] - p["bn2_mean"] * s2
        s2f = p["dw_w"] * s2                  # fold dw-1x1 conv into BN2 scale
        b2f = p["dw_b"] * s2 + b2             # fold dw-1x1 bias into BN2 bias
        chan_pack = chan_pack.at[s, :C_s, 0].set(s1)
        chan_pack = chan_pack.at[s, :C_s, 1].set(b1)
        chan_pack = chan_pack.at[s, :C_s, 2].set(s2f)
        chan_pack = chan_pack.at[s, :C_s, 3].set(b2f)
        # conv weight: (O, C_s, K) -> (O, K, C_s) -> (O, K*C_s)  (tap-major)
        w2 = jnp.transpose(p["conv_w"], (0, 2, 1)).reshape(in_out, K * C_s)
        w_pack = w_pack.at[s, :, :K * C_s].set(w2)
        bias_pack = bias_pack.at[s, :, 0].set(p["conv_b"])

    # ---- lay x out as (G, in_c, NB*Lp) with per-batch zero halos ----
    xb = x
    if Bpad != B:
        xb = jnp.pad(xb, ((0, Bpad - B), (0, 0), (0, 0)))
    xp = jnp.pad(xb, ((0, 0), (0, 0), (pad_left, pad_right)))    # (Bpad,in_c,Lp)
    xp = xp.reshape(G, NB, in_c, Lp).transpose(0, 2, 1, 3).reshape(G, in_c, lanes)

    kernel = functools.partial(_dense_block_kernel, in_c=in_c, in_out=in_out,
                               K=K, pad_left=pad_left, NB=NB, Lp=Lp)

    out = pl.pallas_call(
        kernel,
        out_shape=jax.ShapeDtypeStruct((G, in_out, lanes), jnp.float32),
        grid=(G,),
        in_specs=[
            pl.BlockSpec((None, in_c, lanes), lambda g: (g, 0, 0)),     # x tile
            pl.BlockSpec((4, Ctot, 4), lambda g: (0, 0, 0)),            # chan params
            pl.BlockSpec((4, in_out, K * Ctot), lambda g: (0, 0, 0)),   # conv weights
            pl.BlockSpec((4, in_out, 1), lambda g: (0, 0, 0)),          # conv biases
        ],
        out_specs=pl.BlockSpec((None, in_out, lanes), lambda g: (g, 0, 0)),
        scratch_shapes=[pltpu.VMEM((Ctot, lanes), jnp.float32)],        # feature stack
        compiler_params=pltpu.CompilerParams(
            dimension_semantics=("parallel",)),
    )(xp, chan_pack, w_pack, bias_pack)

    # (G, in_out, NB*Lp) -> (Bpad, in_out, Lp) -> strip halo + batch padding.
    out = out.reshape(G, in_out, NB, Lp).transpose(0, 2, 1, 3)
    out = out.reshape(Bpad, in_out, Lp)
    return out[:B, :, pad_left:pad_left + L]


# ----------------------------------------------------------------------------
# Pure-JAX reference (correctness check only).
# ----------------------------------------------------------------------------
def _conv_stage_ref(x, p):
    eps = 1e-5
    s1 = p["bn1_gamma"] / jnp.sqrt(p["bn1_var"] + eps)
    h = jnp.maximum((x - p["bn1_mean"][None, :, None]) * s1[None, :, None]
                    + p["bn1_beta"][None, :, None], 0.0)
    h = h * p["dw_w"][None, :, None] + p["dw_b"][None, :, None]
    s2 = p["bn2_gamma"] / jnp.sqrt(p["bn2_var"] + eps)
    h = jnp.maximum((h - p["bn2_mean"][None, :, None]) * s2[None, :, None]
                    + p["bn2_beta"][None, :, None], 0.0)
    O, C, K = p["conv_w"].shape
    L = x.shape[-1]
    pad_left = (K - 1) // 2
    hp = jnp.pad(h, ((0, 0), (0, 0), (pad_left, K - 1 - pad_left)))
    out = jnp.zeros((x.shape[0], O, L), jnp.float32)
    for k in range(K):
        out = out + jnp.einsum("oc,bcl->bol", p["conv_w"][:, :, k],
                               hp[:, :, k:k + L])
    return out + p["conv_b"][None, :, None]


def _dense_block_ref(x, params):
    x1 = _conv_stage_ref(x, params["conv1"])
    x2 = _conv_stage_ref(jnp.concatenate([x, x1], axis=1), params["conv2"])
    x3 = _conv_stage_ref(jnp.concatenate([x, x1, x2], axis=1), params["conv3"])
    x4 = _conv_stage_ref(jnp.concatenate([x, x1, x2, x3], axis=1),
                         params["conv4"])
    return x4


# ----------------------------------------------------------------------------
# Deterministic parameter init (shapes follow the PyTorch __init__).
# ----------------------------------------------------------------------------
def init_stage_params(key, c_in, c_out, k):
    ks = jax.random.split(key, 12)

    def u(kk, shape, scale):
        return jax.random.uniform(kk, shape, jnp.float32, -scale, scale)

    return dict(
        bn1_gamma=1.0 + u(ks[0], (c_in,), 0.1),
        bn1_beta=u(ks[1], (c_in,), 0.1),
        bn1_mean=u(ks[2], (c_in,), 0.1),
        bn1_var=1.0 + u(ks[3], (c_in,), 0.1),
        dw_w=u(ks[4], (c_in,), 0.5),          # Conv1d(c_in, c_in, 1, groups=c_in)
        dw_b=u(ks[5], (c_in,), 0.1),
        bn2_gamma=1.0 + u(ks[6], (c_in,), 0.1),
        bn2_beta=u(ks[7], (c_in,), 0.1),
        bn2_mean=u(ks[8], (c_in,), 0.1),
        bn2_var=1.0 + u(ks[9], (c_in,), 0.1),
        conv_w=u(ks[10], (c_out, c_in, k), 0.3),
        conv_b=u(ks[11], (c_out,), 0.1),
    )


if __name__ == "__main__":
    B, in_c, in_out, L, K = 2, 4, 8, 16, 5
    key = jax.random.PRNGKey(0)
    kx, kp = jax.random.split(key)
    x = jax.random.normal(kx, (B, in_c, L), jnp.float32)

    in_chans = [in_c, in_c + in_out, in_c + 2 * in_out, in_c + 3 * in_out]
    pkeys = jax.random.split(kp, 4)
    params = {f"conv{i + 1}": init_stage_params(pkeys[i], c, in_out, K)
              for i, c in enumerate(in_chans)}

    fwd = jax.jit(dense_block_forward)
    out = jax.block_until_ready(fwd(x, params))
    ref = jax.block_until_ready(_dense_block_ref(x, params))

    assert out.shape == (B, in_out, L), out.shape
    np.testing.assert_allclose(np.asarray(out), np.asarray(ref),
                               rtol=2e-3, atol=2e-3)
    print("KERNEL_OK")
</pallas_src>

<mosaic_0001>
module attributes {stable_mosaic.version = 11 : i64} {
  func.func @_dense_block_kernel(%arg0: i32, %arg1: memref<1x4x40xf32, #tpu.memory_space<vmem>>, %arg2: memref<4x28x4xf32, #tpu.memory_space<vmem>>, %arg3: memref<4x8x140xf32, #tpu.memory_space<vmem>>, %arg4: memref<4x8x1xf32, #tpu.memory_space<vmem>>, %arg5: memref<1x8x40xf32, #tpu.memory_space<vmem>>, %arg6: memref<28x40xf32, #tpu.memory_space<vmem>>) attributes {dimension_semantics = [#tpu.dimension_semantics<parallel>], iteration_bounds = array<i64: 1>, scalar_prefetch = 0 : i64, scratch_operands = 1 : i64, tpu.core_type = #tpu.core_type<tc>, window_params = [{transform_indices = @transform_0, window_bounds = array<i64: 1, 4, 40>}, {pipeline_mode = #tpu.pipeline_mode<synchronous>, transform_indices = @transform_1, window_bounds = array<i64: 4, 28, 4>}, {pipeline_mode = #tpu.pipeline_mode<synchronous>, transform_indices = @transform_2, window_bounds = array<i64: 4, 8, 140>}, {pipeline_mode = #tpu.pipeline_mode<synchronous>, transform_indices = @transform_3, window_bounds = array<i64: 4, 8, 1>}, {transform_indices = @transform_4, window_bounds = array<i64: 1, 8, 40>}]} {
    %0 = tpu.iota {dimensions = array<i32: 1>} : vector<1x40xi32>
    %c20_i32 = arith.constant 20 : i32
    %c0_i32 = arith.constant 0 : i32
    %1 = arith.cmpi eq, %c20_i32, %c0_i32 : i32
    %c1_i32 = arith.constant 1 : i32
    %2 = arith.select %1, %c1_i32, %c20_i32 : i32
    %3 = vector.broadcast %2 : i32 to vector<1x40xi32>
    %4 = arith.remsi %0, %3 : vector<1x40xi32>
    %c0_i32_0 = arith.constant 0 : i32
    %5 = vector.broadcast %c0_i32_0 : i32 to vector<1x40xi32>
    %6 = arith.cmpi ne, %4, %5 : vector<1x40xi32>
    %c0_i32_1 = arith.constant 0 : i32
    %7 = vector.broadcast %c0_i32_1 : i32 to vector<1x40xi32>
    %8 = arith.cmpi slt, %4, %7 : vector<1x40xi32>
    %c0_i32_2 = arith.constant 0 : i32
    %9 = arith.cmpi slt, %2, %c0_i32_2 : i32
    %10 = vector.broadcast %9 : i1 to vector<1x40xi1>
    %11 = vector.broadcast %10 : vector<1x40xi1> to vector<1x40xi1>
    %12 = arith.xori %8, %11 : vector<1x40xi1>
    %13 = arith.andi %12, %6 : vector<1x40xi1>
    %14 = vector.broadcast %2 : i32 to vector<1x40xi32>
    %15 = arith.addi %4, %14 : vector<1x40xi32>
    %16 = arith.select %13, %15, %4 : vector<1x40xi1>, vector<1x40xi32>
    %c2_i32 = arith.constant 2 : i32
    %17 = vector.broadcast %c2_i32 : i32 to vector<1x40xi32>
    %18 = arith.cmpi sge, %16, %17 : vector<1x40xi32>
    %c18_i32 = arith.constant 18 : i32
    %19 = vector.broadcast %c18_i32 : i32 to vector<1x40xi32>
    %20 = arith.cmpi slt, %16, %19 : vector<1x40xi32>
    %21 = arith.andi %18, %20 : vector<1x40xi1>
    %22 = arith.extui %21 : vector<1x40xi1> to vector<1x40xi32>
    %23 = arith.sitofp %22 : vector<1x40xi32> to vector<1x40xf32>
    %c0 = arith.constant 0 : index
    %c0_3 = arith.constant 0 : index
    %c0_4 = arith.constant 0 : index
    %24 = vector.load %arg1[%c0, %c0_3, %c0_4] : memref<1x4x40xf32, #tpu.memory_space<vmem>>, vector<1x4x40xf32>
    %25 = vector.shape_cast %24 : vector<1x4x40xf32> to vector<4x40xf32>
    %c0_5 = arith.constant 0 : index
    %c0_6 = arith.constant 0 : index
    %26 = vector.load %arg6[%c0_5, %c0_6] : memref<28x40xf32, #tpu.memory_space<vmem>>, vector<4x40xf32>
    tpu.vector_store %arg6[%c0_5, %c0_6], %25 {strides = array<i32>} : memref<28x40xf32, #tpu.memory_space<vmem>>, vector<4x40xf32>,
    %c0_7 = arith.constant 0 : index
    %c0_8 = arith.constant 0 : index
    %c0_9 = arith.constant 0 : index
    %27 = vector.load %arg2[%c0_7, %c0_8, %c0_9] : memref<4x28x4xf32, #tpu.memory_space<vmem>>, vector<1x4x4xf32>
    %28 = vector.shape_cast %27 : vector<1x4x4xf32> to vector<4x4xf32>
    %29 = vector.extract_strided_slice %28 {offsets = [0, 0], sizes = [4, 1], strides = [1, 1]} : vector<4x4xf32> to vector<4x1xf32>
    %30 = vector.extract_strided_slice %28 {offsets = [0, 1], sizes = [4, 1], strides = [1, 1]} : vector<4x4xf32> to vector<4x1xf32>
    %31 = vector.extract_strided_slice %28 {offsets = [0, 2], sizes = [4, 1], strides = [1, 1]} : vector<4x4xf32> to vector<4x1xf32>
    %32 = vector.extract_strided_slice %28 {offsets = [0, 3], sizes = [4, 1], strides = [1, 1]} : vector<4x4xf32> to vector<4x1xf32>
    %c0_10 = arith.constant 0 : index
    %c0_11 = arith.constant 0 : index
    %33 = vector.load %arg6[%c0_10, %c0_11] : memref<28x40xf32, #tpu.memory_space<vmem>>, vector<4x40xf32>
    %34 = vector.broadcast %29 : vector<4x1xf32> to vector<4x40xf32>
    %35 = arith.mulf %33, %34 : vector<4x40xf32>
    %36 = vector.broadcast %30 : vector<4x1xf32> to vector<4x40xf32>
    %37 = arith.addf %35, %36 : vector<4x40xf32>
    %cst = arith.constant 0.000000e+00 : f32
    %38 = vector.broadcast %cst : f32 to vector<4x40xf32>
    %39 = arith.maximumf %37, %38 : vector<4x40xf32>
    %40 = vector.broadcast %31 : vector<4x1xf32> to vector<4x40xf32>
    %41 = arith.mulf %39, %40 : vector<4x40xf32>
    %42 = vector.broadcast %32 : vector<4x1xf32> to vector<4x40xf32>
    %43 = arith.addf %41, %42 : vector<4x40xf32>
    %cst_12 = arith.constant 0.000000e+00 : f32
    %44 = vector.broadcast %cst_12 : f32 to vector<4x40xf32>
    %45 = arith.maximumf %43, %44 : vector<4x40xf32>
    %46 = vector.broadcast %23 : vector<1x40xf32> to vector<4x40xf32>
    %47 = arith.mulf %45, %46 : vector<4x40xf32>
    %cst_13 = arith.constant 0.000000e+00 : f32
    %48 = vector.broadcast %cst_13 : f32 to vector<4x2xf32>
    %49 = vector.extract_strided_slice %47 {offsets = [0, 0], sizes = [4, 38], strides = [1, 1]} : vector<4x40xf32> to vector<4x38xf32>
    %50 = tpu.concatenate %48, %49 in 1 : vector<4x2xf32>, vector<4x38xf32> -> vector<4x40xf32>
    %cst_14 = arith.constant 0.000000e+00 : f32
    %51 = vector.broadcast %cst_14 : f32 to vector<4x1xf32>
    %52 = vector.extract_strided_slice %47 {offsets = [0, 0], sizes = [4, 39], strides = [1, 1]} : vector<4x40xf32> to vector<4x39xf32>
    %53 = tpu.concatenate %51, %52 in 1 : vector<4x1xf32>, vector<4x39xf32> -> vector<4x40xf32>
    %cst_15 = arith.constant 0.000000e+00 : f32
    %54 = vector.broadcast %cst_15 : f32 to vector<4x1xf32>
    %55 = vector.extract_strided_slice %47 {offsets = [0, 1], sizes = [4, 39], strides = [1, 1]} : vector<4x40xf32> to vector<4x39xf32>
    %56 = tpu.concatenate %55, %54 in 1 : vector<4x39xf32>, vector<4x1xf32> -> vector<4x40xf32>
    %cst_16 = arith.constant 0.000000e+00 : f32
    %57 = vector.broadcast %cst_16 : f32 to vector<4x2xf32>
    %58 = vector.extract_strided_slice %47 {offsets = [0, 2], sizes = [4, 38], strides = [1, 1]} : vector<4x40xf32> to vector<4x38xf32>
    %59 = tpu.concatenate %58, %57 in 1 : vector<4x38xf32>, vector<4x2xf32> -> vector<4x40xf32>
    %60 = tpu.concatenate %50, %53, %47, %56, %59 in 0 : vector<4x40xf32>, vector<4x40xf32>, vector<4x40xf32>, vector<4x40xf32>, vector<4x40xf32> -> vector<20x40xf32>
    %c0_17 = arith.constant 0 : index
    %c0_18 = arith.constant 0 : index
    %c0_19 = arith.constant 0 : index
    %61 = vector.load %arg3[%c0_17, %c0_18, %c0_19] : memref<4x8x140xf32, #tpu.memory_space<vmem>>, vector<1x8x20xf32>
    %62 = vector.shape_cast %61 : vector<1x8x20xf32> to vector<8x20xf32>
    %cst_20 = arith.constant dense<0.000000e+00> : vector<8x40xf32>
    %63 = tpu.matmul %62, %60, %cst_20 {dimension_numbers = #tpu.dot_dimension_numbers<[1], [0], [0], [1], [0, 0, 1, 1], [], []>} : vector<8x20xf32>, vector<20x40xf32>, vector<8x40xf32> -> vector<8x40xf32>
    %c0_21 = arith.constant 0 : index
    %c0_22 = arith.constant 0 : index
    %c0_23 = arith.constant 0 : index
    %64 = vector.load %arg4[%c0_21, %c0_22, %c0_23] : memref<4x8x1xf32, #tpu.memory_space<vmem>>, vector<1x8x1xf32>
    %65 = vector.shape_cast %64 : vector<1x8x1xf32> to vector<8x1xf32>
    %66 = vector.broadcast %65 : vector<8x1xf32> to vector<8x40xf32>
    %67 = arith.addf %63, %66 : vector<8x40xf32>
    %c4 = arith.constant 4 : index
    %c0_24 = arith.constant 0 : index
    %68 = vector.load %arg6[%c4, %c0_24] : memref<28x40xf32, #tpu.memory_space<vmem>>, vector<8x40xf32>
    tpu.vector_store %arg6[%c4, %c0_24], %67 {strides = array<i32>} : memref<28x40xf32, #tpu.memory_space<vmem>>, vector<8x40xf32>,
    %c1 = arith.constant 1 : index
    %c0_25 = arith.constant 0 : index
    %c0_26 = arith.constant 0 : index
    %69 = vector.load %arg2[%c1, %c0_25, %c0_26] : memref<4x28x4xf32, #tpu.memory_space<vmem>>, vector<1x12x4xf32>
    %70 = vector.shape_cast %69 : vector<1x12x4xf32> to vector<12x4xf32>
    %71 = vector.extract_strided_slice %70 {offsets = [0, 0], sizes = [12, 1], strides = [1, 1]} : vector<12x4xf32> to vector<12x1xf32>
    %72 = vector.extract_strided_slice %70 {offsets = [0, 1], sizes = [12, 1], strides = [1, 1]} : vector<12x4xf32> to vector<12x1xf32>
    %73 = vector.extract_strided_slice %70 {offsets = [0, 2], sizes = [12, 1], strides = [1, 1]} : vector<12x4xf32> to vector<12x1xf32>
    %74 = vector.extract_strided_slice %70 {offsets = [0, 3], sizes = [12, 1], strides = [1, 1]} : vector<12x4xf32> to vector<12x1xf32>
    %c0_27 = arith.constant 0 : index
    %c0_28 = arith.constant 0 : index
    %75 = vector.load %arg6[%c0_27, %c0_28] : memref<28x40xf32, #tpu.memory_space<vmem>>, vector<12x40xf32>
    %76 = vector.broadcast %71 : vector<12x1xf32> to vector<12x40xf32>
    %77 = arith.mulf %75, %76 : vector<12x40xf32>
    %78 = vector.broadcast %72 : vector<12x1xf32> to vector<12x40xf32>
    %79 = arith.addf %77, %78 : vector<12x40xf32>
    %cst_29 = arith.constant 0.000000e+00 : f32
    %80 = vector.broadcast %cst_29 : f32 to vector<12x40xf32>
    %81 = arith.maximumf %79, %80 : vector<12x40xf32>
    %82 = vector.broadcast %73 : vector<12x1xf32> to vector<12x40xf32>
    %83 = arith.mulf %81, %82 : vector<12x40xf32>
    %84 = vector.broadcast %74 : vector<12x1xf32> to vector<12x40xf32>
    %85 = arith.addf %83, %84 : vector<12x40xf32>
    %cst_30 = arith.constant 0.000000e+00 : f32
    %86 = vector.broadcast %cst_30 : f32 to vector<12x40xf32>
    %87 = arith.maximumf %85, %86 : vector<12x40xf32>
    %88 = vector.broadcast %23 : vector<1x40xf32> to vector<12x40xf32>
    %89 = arith.mulf %87, %88 : vector<12x40xf32>
    %cst_31 = arith.constant 0.000000e+00 : f32
    %90 = vector.broadcast %cst_31 : f32 to vector<12x2xf32>
    %91 = vector.extract_strided_slice %89 {offsets = [0, 0], sizes = [12, 38], strides = [1, 1]} : vector<12x40xf32> to vector<12x38xf32>
    %92 = tpu.concatenate %90, %91 in 1 : vector<12x2xf32>, vector<12x38xf32> -> vector<12x40xf32>
    %cst_32 = arith.constant 0.000000e+00 : f32
    %93 = vector.broadcast %cst_32 : f32 to vector<12x1xf32>
    %94 = vector.extract_strided_slice %89 {offsets = [0, 0], sizes = [12, 39], strides = [1, 1]} : vector<12x40xf32> to vector<12x39xf32>
    %95 = tpu.concatenate %93, %94 in 1 : vector<12x1xf32>, vector<12x39xf32> -> vector<12x40xf32>
    %cst_33 = arith.constant 0.000000e+00 : f32
    %96 = vector.broadcast %cst_33 : f32 to vector<12x1xf32>
    %97 = vector.extract_strided_slice %89 {offsets = [0, 1], sizes = [12, 39], strides = [1, 1]} : vector<12x40xf32> to vector<12x39xf32>
    %98 = tpu.concatenate %97, %96 in 1 : vector<12x39xf32>, vector<12x1xf32> -> vector<12x40xf32>
    %cst_34 = arith.constant 0.000000e+00 : f32
    %99 = vector.broadcast %cst_34 : f32 to vector<12x2xf32>
    %100 = vector.extract_strided_slice %89 {offsets = [0, 2], sizes = [12, 38], strides = [1, 1]} : vector<12x40xf32> to vector<12x38xf32>
    %101 = tpu.concatenate %100, %99 in 1 : vector<12x38xf32>, vector<12x2xf32> -> vector<12x40xf32>
    %102 = tpu.concatenate %92, %95, %89, %98, %101 in 0 : vector<12x40xf32>, vector<12x40xf32>, vector<12x40xf32>, vector<12x40xf32>, vector<12x40xf32> -> vector<60x40xf32>
    %c1_35 = arith.constant 1 : index
    %c0_36 = arith.constant 0 : index
    %c0_37 = arith.constant 0 : index
    %103 = vector.load %arg3[%c1_35, %c0_36, %c0_37] : memref<4x8x140xf32, #tpu.memory_space<vmem>>, vector<1x8x60xf32>
    %104 = vector.shape_cast %103 : vector<1x8x60xf32> to vector<8x60xf32>
    %cst_38 = arith.constant dense<0.000000e+00> : vector<8x40xf32>
    %105 = tpu.matmul %104, %102, %cst_38 {dimension_numbers = #tpu.dot_dimension_numbers<[1], [0], [0], [1], [0, 0, 1, 1], [], []>} : vector<8x60xf32>, vector<60x40xf32>, vector<8x40xf32> -> vector<8x40xf32>
    %c1_39 = arith.constant 1 : index
    %c0_40 = arith.constant 0 : index
    %c0_41 = arith.constant 0 : index
    %106 = vector.load %arg4[%c1_39, %c0_40, %c0_41] : memref<4x8x1xf32, #tpu.memory_space<vmem>>, vector<1x8x1xf32>
    %107 = vector.shape_cast %106 : vector<1x8x1xf32> to vector<8x1xf32>
    %108 = vector.broadcast %107 : vector<8x1xf32> to vector<8x40xf32>
    %109 = arith.addf %105, %108 : vector<8x40xf32>
    %c12 = arith.constant 12 : index
    %c0_42 = arith.constant 0 : index
    %110 = vector.load %arg6[%c12, %c0_42] : memref<28x40xf32, #tpu.memory_space<vmem>>, vector<8x40xf32>
    tpu.vector_store %arg6[%c12, %c0_42], %109 {strides = array<i32>} : memref<28x40xf32, #tpu.memory_space<vmem>>, vector<8x40xf32>,
    %c2 = arith.constant 2 : index
    %c0_43 = arith.constant 0 : index
    %c0_44 = arith.constant 0 : index
    %111 = vector.load %arg2[%c2, %c0_43, %c0_44] : memref<4x28x4xf32, #tpu.memory_space<vmem>>, vector<1x20x4xf32>
    %112 = vector.shape_cast %111 : vector<1x20x4xf32> to vector<20x4xf32>
    %113 = vector.extract_strided_slice %112 {offsets = [0, 0], sizes = [20, 1], strides = [1, 1]} : vector<20x4xf32> to vector<20x1xf32>
    %114 = vector.extract_strided_slice %112 {offsets = [0, 1], sizes = [20, 1], strides = [1, 1]} : vector<20x4xf32> to vector<20x1xf32>
    %115 = vector.extract_strided_slice %112 {offsets = [0, 2], sizes = [20, 1], strides = [1, 1]} : vector<20x4xf32> to vector<20x1xf32>
    %116 = vector.extract_strided_slice %112 {offsets = [0, 3], sizes = [20, 1], strides = [1, 1]} : vector<20x4xf32> to vector<20x1xf32>
    %c0_45 = arith.constant 0 : index
    %c0_46 = arith.constant 0 : index
    %117 = vector.load %arg6[%c0_45, %c0_46] : memref<28x40xf32, #tpu.memory_space<vmem>>, vector<20x40xf32>
    %118 = vector.broadcast %113 : vector<20x1xf32> to vector<20x40xf32>
    %119 = arith.mulf %117, %118 : vector<20x40xf32>
    %120 = vector.broadcast %114 : vector<20x1xf32> to vector<20x40xf32>
    %121 = arith.addf %119, %120 : vector<20x40xf32>
    %cst_47 = arith.constant 0.000000e+00 : f32
    %122 = vector.broadcast %cst_47 : f32 to vector<20x40xf32>
    %123 = arith.maximumf %121, %122 : vector<20x40xf32>
    %124 = vector.broadcast %115 : vector<20x1xf32> to vector<20x40xf32>
    %125 = arith.mulf %123, %124 : vector<20x40xf32>
    %126 = vector.broadcast %116 : vector<20x1xf32> to vector<20x40xf32>
    %127 = arith.addf %125, %126 : vector<20x40xf32>
    %cst_48 = arith.constant 0.000000e+00 : f32
    %128 = vector.broadcast %cst_48 : f32 to vector<20x40xf32>
    %129 = arith.maximumf %127, %128 : vector<20x40xf32>
    %130 = vector.broadcast %23 : vector<1x40xf32> to vector<20x40xf32>
    %131 = arith.mulf %129, %130 : vector<20x40xf32>
    %cst_49 = arith.constant 0.000000e+00 : f32
    %132 = vector.broadcast %cst_49 : f32 to vector<20x2xf32>
    %133 = vector.extract_strided_slice %131 {offsets = [0, 0], sizes = [20, 38], strides = [1, 1]} : vector<20x40xf32> to vector<20x38xf32>
    %134 = tpu.concatenate %132, %133 in 1 : vector<20x2xf32>, vector<20x38xf32> -> vector<20x40xf32>
    %cst_50 = arith.constant 0.000000e+00 : f32
    %135 = vector.broadcast %cst_50 : f32 to vector<20x1xf32>
    %136 = vector.extract_strided_slice %131 {offsets = [0, 0], sizes = [20, 39], strides = [1, 1]} : vector<20x40xf32> to vector<20x39xf32>
    %137 = tpu.concatenate %135, %136 in 1 : vector<20x1xf32>, vector<20x39xf32> -> vector<20x40xf32>
    %cst_51 = arith.constant 0.000000e+00 : f32
    %138 = vector.broadcast %cst_51 : f32 to vector<20x1xf32>
    %139 = vector.extract_strided_slice %131 {offsets = [0, 1], sizes = [20, 39], strides = [1, 1]} : vector<20x40xf32> to vector<20x39xf32>
    %140 = tpu.concatenate %139, %138 in 1 : vector<20x39xf32>, vector<20x1xf32> -> vector<20x40xf32>
    %cst_52 = arith.constant 0.000000e+00 : f32
    %141 = vector.broadcast %cst_52 : f32 to vector<20x2xf32>
    %142 = vector.extract_strided_slice %131 {offsets = [0, 2], sizes = [20, 38], strides = [1, 1]} : vector<20x40xf32> to vector<20x38xf32>
    %143 = tpu.concatenate %142, %141 in 1 : vector<20x38xf32>, vector<20x2xf32> -> vector<20x40xf32>
    %144 = tpu.concatenate %134, %137, %131, %140, %143 in 0 : vector<20x40xf32>, vector<20x40xf32>, vector<20x40xf32>, vector<20x40xf32>, vector<20x40xf32> -> vector<100x40xf32>
    %c2_53 = arith.constant 2 : index
    %c0_54 = arith.constant 0 : index
    %c0_55 = arith.constant 0 : index
    %145 = vector.load %arg3[%c2_53, %c0_54, %c0_55] : memref<4x8x140xf32, #tpu.memory_space<vmem>>, vector<1x8x100xf32>
    %146 = vector.shape_cast %145 : vector<1x8x100xf32> to vector<8x100xf32>
    %cst_56 = arith.constant dense<0.000000e+00> : vector<8x40xf32>
    %147 = tpu.matmul %146, %144, %cst_56 {dimension_numbers = #tpu.dot_dimension_numbers<[1], [0], [0], [1], [0, 0, 1, 1], [], []>} : vector<8x100xf32>, vector<100x40xf32>, vector<8x40xf32> -> vector<8x40xf32>
    %c2_57 = arith.constant 2 : index
    %c0_58 = arith.constant 0 : index
    %c0_59 = arith.constant 0 : index
    %148 = vector.load %arg4[%c2_57, %c0_58, %c0_59] : memref<4x8x1xf32, #tpu.memory_space<vmem>>, vector<1x8x1xf32>
    %149 = vector.shape_cast %148 : vector<1x8x1xf32> to vector<8x1xf32>
    %150 = vector.broadcast %149 : vector<8x1xf32> to vector<8x40xf32>
    %151 = arith.addf %147, %150 : vector<8x40xf32>
    %c20 = arith.constant 20 : index
    %c0_60 = arith.constant 0 : index
    %152 = vector.load %arg6[%c20, %c0_60] : memref<28x40xf32, #tpu.memory_space<vmem>>, vector<8x40xf32>
    tpu.vector_store %arg6[%c20, %c0_60], %151 {strides = array<i32>} : memref<28x40xf32, #tpu.memory_space<vmem>>, vector<8x40xf32>,
    %c3 = arith.constant 3 : index
    %c0_61 = arith.constant 0 : index
    %c0_62 = arith.constant 0 : index
    %153 = vector.load %arg2[%c3, %c0_61, %c0_62] : memref<4x28x4xf32, #tpu.memory_space<vmem>>, vector<1x28x4xf32>
    %154 = vector.shape_cast %153 : vector<1x28x4xf32> to vector<28x4xf32>
    %155 = vector.extract_strided_slice %154 {offsets = [0, 0], sizes = [28, 1], strides = [1, 1]} : vector<28x4xf32> to vector<28x1xf32>
    %156 = vector.extract_strided_slice %154 {offsets = [0, 1], sizes = [28, 1], strides = [1, 1]} : vector<28x4xf32> to vector<28x1xf32>
    %157 = vector.extract_strided_slice %154 {offsets = [0, 2], sizes = [28, 1], strides = [1, 1]} : vector<28x4xf32> to vector<28x1xf32>
    %158 = vector.extract_strided_slice %154 {offsets = [0, 3], sizes = [28, 1], strides = [1, 1]} : vector<28x4xf32> to vector<28x1xf32>
    %c0_63 = arith.constant 0 : index
    %c0_64 = arith.constant 0 : index
    %159 = vector.load %arg6[%c0_63, %c0_64] : memref<28x40xf32, #tpu.memory_space<vmem>>, vector<28x40xf32>
    %160 = vector.broadcast %155 : vector<28x1xf32> to vector<28x40xf32>
    %161 = arith.mulf %159, %160 : vector<28x40xf32>
    %162 = vector.broadcast %156 : vector<28x1xf32> to vector<28x40xf32>
    %163 = arith.addf %161, %162 : vector<28x40xf32>
    %cst_65 = arith.constant 0.000000e+00 : f32
    %164 = vector.broadcast %cst_65 : f32 to vector<28x40xf32>
    %165 = arith.maximumf %163, %164 : vector<28x40xf32>
    %166 = vector.broadcast %157 : vector<28x1xf32> to vector<28x40xf32>
    %167 = arith.mulf %165, %166 : vector<28x40xf32>
    %168 = vector.broadcast %158 : vector<28x1xf32> to vector<28x40xf32>
    %169 = arith.addf %167, %168 : vector<28x40xf32>
    %cst_66 = arith.constant 0.000000e+00 : f32
    %170 = vector.broadcast %cst_66 : f32 to vector<28x40xf32>
    %171 = arith.maximumf %169, %170 : vector<28x40xf32>
    %172 = vector.broadcast %23 : vector<1x40xf32> to vector<28x40xf32>
    %173 = arith.mulf %171, %172 : vector<28x40xf32>
    %cst_67 = arith.constant 0.000000e+00 : f32
    %174 = vector.broadcast %cst_67 : f32 to vector<28x2xf32>
    %175 = vector.extract_strided_slice %173 {offsets = [0, 0], sizes = [28, 38], strides = [1, 1]} : vector<28x40xf32> to vector<28x38xf32>
    %176 = tpu.concatenate %174, %175 in 1 : vector<28x2xf32>, vector<28x38xf32> -> vector<28x40xf32>
    %cst_68 = arith.constant 0.000000e+00 : f32
    %177 = vector.broadcast %cst_68 : f32 to vector<28x1xf32>
    %178 = vector.extract_strided_slice %173 {offsets = [0, 0], sizes = [28, 39], strides = [1, 1]} : vector<28x40xf32> to vector<28x39xf32>
    %179 = tpu.concatenate %177, %178 in 1 : vector<28x1xf32>, vector<28x39xf32> -> vector<28x40xf32>
    %cst_69 = arith.constant 0.000000e+00 : f32
    %180 = vector.broadcast %cst_69 : f32 to vector<28x1xf32>
    %181 = vector.extract_strided_slice %173 {offsets = [0, 1], sizes = [28, 39], strides = [1, 1]} : vector<28x40xf32> to vector<28x39xf32>
    %182 = tpu.concatenate %181, %180 in 1 : vector<28x39xf32>, vector<28x1xf32> -> vector<28x40xf32>
    %cst_70 = arith.constant 0.000000e+00 : f32
    %183 = vector.broadcast %cst_70 : f32 to vector<28x2xf32>
    %184 = vector.extract_strided_slice %173 {offsets = [0, 2], sizes = [28, 38], strides = [1, 1]} : vector<28x40xf32> to vector<28x38xf32>
    %185 = tpu.concatenate %184, %183 in 1 : vector<28x38xf32>, vector<28x2xf32> -> vector<28x40xf32>
    %186 = tpu.concatenate %176, %179, %173, %182, %185 in 0 : vector<28x40xf32>, vector<28x40xf32>, vector<28x40xf32>, vector<28x40xf32>, vector<28x40xf32> -> vector<140x40xf32>
    %c3_71 = arith.constant 3 : index
    %c0_72 = arith.constant 0 : index
    %c0_73 = arith.constant 0 : index
    %187 = vector.load %arg3[%c3_71, %c0_72, %c0_73] : memref<4x8x140xf32, #tpu.memory_space<vmem>>, vector<1x8x140xf32>
    %188 = vector.shape_cast %187 : vector<1x8x140xf32> to vector<8x140xf32>
    %cst_74 = arith.constant dense<0.000000e+00> : vector<8x40xf32>
    %189 = tpu.matmul %188, %186, %cst_74 {dimension_numbers = #tpu.dot_dimension_numbers<[1], [0], [0], [1], [0, 0, 1, 1], [], []>} : vector<8x140xf32>, vector<140x40xf32>, vector<8x40xf32> -> vector<8x40xf32>
    %c3_75 = arith.constant 3 : index
    %c0_76 = arith.constant 0 : index
    %c0_77 = arith.constant 0 : index
    %190 = vector.load %arg4[%c3_75, %c0_76, %c0_77] : memref<4x8x1xf32, #tpu.memory_space<vmem>>, vector<1x8x1xf32>
    %191 = vector.shape_cast %190 : vector<1x8x1xf32> to vector<8x1xf32>
    %192 = vector.broadcast %191 : vector<8x1xf32> to vector<8x40xf32>
    %193 = arith.addf %189, %192 : vector<8x40xf32>
    %c0_78 = arith.constant 0 : index
    %c0_79 = arith.constant 0 : index
    %c0_80 = arith.constant 0 : index
    %194 = vector.load %arg5[%c0_78, %c0_79, %c0_80] : memref<1x8x40xf32, #tpu.memory_space<vmem>>, vector<1x8x40xf32>
    %195 = vector.shape_cast %194 : vector<1x8x40xf32> to vector<8x40xf32>
    %196 = vector.shape_cast %193 : vector<8x40xf32> to vector<1x8x40xf32>
    tpu.vector_store %arg5[%c0_78, %c0_79, %c0_80], %196 {strides = array<i32>} : memref<1x8x40xf32, #tpu.memory_space<vmem>>, vector<1x8x40xf32>,
    return
  }
  func.func @transform_0(%arg0: i32) -> (i32, i32, i32) {
    %c0_i32 = arith.constant 0 : i32
    %c0_i32_0 = arith.constant 0 : i32
    %c0_i32_1 = arith.constant 0 : i32
    return %arg0, %c0_i32, %c0_i32_0 : i32, i32, i32
  }
  func.func @transform_1(%arg0: i32) -> (i32, i32, i32) {
    %c0_i32 = arith.constant 0 : i32
    %c0_i32_0 = arith.constant 0 : i32
    %c0_i32_1 = arith.constant 0 : i32
    %c0_i32_2 = arith.constant 0 : i32
    return %c0_i32, %c0_i32_0, %c0_i32_1 : i32, i32, i32
  }
  func.func @transform_2(%arg0: i32) -> (i32, i32, i32) {
    %c0_i32 = arith.constant 0 : i32
    %c0_i32_0 = arith.constant 0 : i32
    %c0_i32_1 = arith.constant 0 : i32
    %c0_i32_2 = arith.constant 0 : i32
    return %c0_i32, %c0_i32_0, %c0_i32_1 : i32, i32, i32
  }
  func.func @transform_3(%arg0: i32) -> (i32, i32, i32) {
    %c0_i32 = arith.constant 0 : i32
    %c0_i32_0 = arith.constant 0 : i32
    %c0_i32_1 = arith.constant 0 : i32
    %c0_i32_2 = arith.constant 0 : i32
    return %c0_i32, %c0_i32_0, %c0_i32_1 : i32, i32, i32
  }
  func.func @transform_4(%arg0: i32) -> (i32, i32, i32) {
    %c0_i32 = arith.constant 0 : i32
    %c0_i32_0 = arith.constant 0 : i32
    %c0_i32_1 = arith.constant 0 : i32
    return %arg0, %c0_i32, %c0_i32_0 : i32, i32, i32
  }
}

</mosaic_0001>

<bundles_post_ra>
// kernel: dense_block_forward.1
= control target key start
LH: loop header
LB: loop body
LE: loop exit
PB: predicated region body
PF: predicated region fallthrough
CT: control target
= control target key end

     0   :  { %v1225_v0 = vmov 0   ;;  %v1226_v2 = vmov 2   ;;  %vm41_vm0 = vcmask 322560   ;;  %v1227_v4 = vmov 1   ;;  %s1233_s19 = smov 1   ;;  %s1234_s20 = smov 126   ;;  %s1591_s1 = inlined_call_operand.vmem [shape: f32[4,28,4], index: 1, kind: input, shape index: {}]   ;;  %s1592_s0 = inlined_call_operand.vmem [shape: f32[1,4,40], index: 0, kind: input, shape index: {}]   ;;  %s1593_s3 = inlined_call_operand.vmem [shape: f32[4,8,1], index: 3, kind: input, shape index: {}]   ;;  %s1594_s2 = inlined_call_operand.vmem [shape: f32[4,8,140], index: 2, kind: input, shape index: {}]   ;;  %s1595_s4 = inlined_call_operand.vmem [shape: f32[1,8,40], index: 4, kind: output, shape index: {}]  }
   0x1   :  { %1122 = vset.pattern.permute.xlu0 %v1225_v0  ;;  %v43_v1 = vld [vmem:[%s1591_s1] sm:$0xf]  ;;  %1124 = vset.pattern.permute.xlu1 %v1226_v2  ;;  %v1228_v5 = vmov 3   ;;  %v17_v6 = vlaneseq  ;;  %v1229_v24 = vmov 0.0|0.0   ;;  %v1230_v26 = vmov 0.0   ;;  %s1235_s21 = smov 2  }
   0x2   :  { %v40_v3 = vld [vmem:[%s1592_s0] sm:$0xf]  ;;  %47 = vperm.xlu0 %1122, %v43_v1   ;;  %58 = vperm.xlu1 %1124, %v43_v1   ;;  %vm1231_vm7 = vmmov 0   ;;  %s1232_s0 = smov 127   ;;  %v917_v32 = vld [vmem:[%s1591_s1 + $0x28] sm:$0xf] }
   0x3   :  { %42 = vst.msk [vmem:[#allocation2] sm:$0xf] %vm41_vm0, %v40_v3  ;;  %v18_v7 = vand.u32 127, %v17_v6  ;;  %1040 = vmatprep.subr.bf16.mxu1 %v1229_v24  ;;  %1043 = vmatprep.subr.bf16.mxu0 %v1229_v24  ;;  %v100_v30 = vld [vmem:[%s1593_s3] sm:$0xff]  ;;  %vm83_vm8 = vcmask 318464   ;;  %vm78_vm9 = vcmask 7168  }
   0x4   :  { %989 = vmatprep.mubr.msk.f32.mxu1 %vm1231_vm7, %v1230_v26  ;;  %1008 = vmatprep.mubr.msk.f32.mxu0 %vm1231_vm7, %v1230_v26  ;;  %v916_v31 = vld [vmem:[%s1591_s1 + $0x20] sm:$0xff]  ;;  %vm73_vm10 = vcmask 15360   ;;  %vm96_vm11 = vcmask 1043456   ;;  %vm88_vm12 = vcmask 310272   ;;  %vm106_vm13 = vcmask 162816  }
   0x5   :  { %v1274_v8 = vmul.u32.u64.low 3435973837, %v18_v7  ;;  %v1275_v9 = vmul.u32.u64.high 3435973837, %v18_v7, %v1274_v8  ;;  %v99_v45 = vld [vmem:[%s1594_s2] sm:$0xff]  ;;  %vm183_vm14 = vcmask 326656   ;;  %vm1363_vm15 = vmneg %vm73_vm10  ;;  %vm1236_vm0 = vmmov 1  }
   0x6   :  { %1123 = vset.pattern.permute.xlu0 %v1227_v4  ;;  %1125 = vset.pattern.permute.xlu1 %v1228_v5 }
   0x7   :  { %52 = vperm.xlu0 %1123, %v43_v1   ;;  %63 = vperm.xlu1 %1125, %v43_v1   ;;  %v25_v10 = vshrl.u32 %v1275_v9, 4 }
   0x9   :  { %v26_v11 = vmul.u32 20, %v25_v10 }
   0xa   :  { %v44_v15 = vld [vmem:[#allocation2] sm:$0xf] }
   0xb   :  { %1126 = vset.pattern.permute.xlu1 %v1225_v0  ;;  %1127 = vset.pattern.permute.xlu0 %v1225_v0  ;;  %v27_v12 = vsub.s32 %v18_v7, %v26_v11 }
   0xd   :  { %vm30_vm1 = vcmp.ne.s32.totalorder %v27_v12, 0  ;;  %vm31_vm2 = vcmp.lt.s32.totalorder %v27_v12, 0  ;;  %v33_v14 = vadd.s32 20, %v27_v12 }
   0xe   :  { %vm32_vm3 = vmand %vm31_vm2, %vm30_vm1 }
   0xf   :  { %v34_v18 = vsel %vm32_vm3, %v33_v14, %v27_v12  ;;  %vm1372_vm1 = vmpackc.low %vm1236_vm0, %vm1363_vm15  ;;  %vm297_vm3 = vcmask 490496  }
  0x10   :  { %vm35_vm4 = vcmp.ge.s32.totalorder %v34_v18, 2  ;;  %vm36_vm5 = vcmp.lt.s32.totalorder %v34_v18, 18  ;;  %v926_v18 = vld [vmem:[%s1591_s1 + $0x48] sm:$0xff]  ;;  %vm1391_vm2 = vmpackc.low %vm96_vm11, %vm88_vm12 }
  0x11   :  { %vm37_vm6 = vmand %vm35_vm4, %vm36_vm5 }
  0x12   :  { %v1281_v27 = vsel %vm37_vm6, 1.0, %v1230_v26  ;;  %vm1059_vm4 = vmpackc.low %vm1363_vm15, %vm1363_vm15  ;;  %vm538_vm6 = vcmask 818176  }
  0x13   :  { %vm1491_vm5 = vmpackc.low %vm88_vm12, %vm88_vm12 }
  0x81   :  { %v48_v13 = vpop.permute.xlu0 %47  ;;  %v59_v16 = vpop.permute.xlu1 %58 }
  0x82   :  { %v50_v17 = vmul.f32 %v48_v13, %v44_v15 }
  0x86   :  { %v53_v19 = vpop.permute.xlu0 %52  ;;  %v64_v22 = vpop.permute.xlu1 %63 }
  0x87   :  { %v55_v20 = vadd.f32 %v53_v19, %v50_v17  ;;  %v925_v17 = vld [vmem:[%s1591_s1 + $0x40] sm:$0xff]  ;;  %v927_v19 = vld [vmem:[%s1591_s1 + $0x50] sm:$0xf] }
  0x89   :  { %v56_v21 = vmax.f32 %v55_v20, 0.0  ;;  %v919_v20 = vld [vmem:[%s1593_s3 + $0x8] sm:$0xff] }
  0x8b   :  { %v61_v23 = vmul.f32 %v59_v16, %v56_v21 }
  0x8d   :  { %v66_v25 = vadd.f32 %v64_v22, %v61_v23 }
  0x8f   :  { %v67_v28 = vmax.f32 %v66_v25, 0.0 }
  0x91   :  { %v68_v29 = vmul.f32 %v1281_v27, %v67_v28 }
  0x93   :  { %80 = vrot.lane.b32.xlu0 %v68_v29, %s1232_s0  ;;  %75 = vrot.lane.b32.xlu1 %v68_v29, %s1233_s19 }
  0x97   :  { %85 = vrot.lane.b32.xlu0 %v68_v29, %s1234_s20  ;;  %70 = vrot.lane.b32.xlu1 %v68_v29, %s1235_s21 }
  0x9b   :  { %103 = vperm.xlu1 %1126, %v100_v30   ;;  %192 = vperm.xlu0 %1127, %v916_v31  }
  0x9f   :  { %197 = vperm.xlu1 %1126, %v917_v32   ;;  %1129 = vset.pattern.permute.xlu0 %v1227_v4 }
  0xa0   :  { %207 = vperm.xlu0 %1129, %v917_v32  }
  0xa3   :  { %1128 = vset.pattern.permute.xlu1 %v1227_v4 }
  0xa4   :  { %203 = vperm.xlu1 %1128, %v916_v31   ;;  %1131 = vset.pattern.permute.xlu0 %v1228_v5 }
  0xa5   :  { %225 = vperm.xlu0 %1131, %v916_v31  }
  0xa8   :  { %1130 = vset.pattern.permute.xlu1 %v1226_v2 }
  0xa9   :  { %215 = vperm.xlu1 %1130, %v916_v31   ;;  %1148 = vset.pattern.permute.xlu0 %v1225_v0 }
  0xad   :  { %219 = vperm.xlu1 %1130, %v917_v32  }
  0xb1   :  { %1132 = vset.pattern.permute.xlu1 %v1228_v5 }
  0xb2   :  { %229 = vperm.xlu1 %1132, %v917_v32  }
  0xb6   :  { %1149 = vset.pattern.permute.xlu1 %v1225_v0 }
 0x105   :  { %v81_v33 = vpop.permute.xlu0 %80  ;;  %v76_v34 = vpop.permute.xlu1 %75 }
 0x106   :  { %v84_v35 = vsel %vm83_vm8, %v81_v33, 0.0  ;;  %v79_v36 = vsel %vm78_vm9, 0.0, %v76_v34 }
 0x107   :  { %v94_v37 = vrot.slane %v84_v35, 4  ;;  %v91_v38 = vrot.slane %v79_v36, 4 }
 0x109   :  { %v71_v39 = vpop.permute.xlu1 %70  ;;  %v98_v42 = vsel %vm96_vm11, %v68_v29, %v94_v37  ;;  %v86_v44 = vpop.permute.xlu0 %85 }
 0x10a   :  { %v74_v40 = vsel %vm73_vm10, 0.0, %v71_v39  ;;  %v89_v46 = vsel %vm88_vm12, %v86_v44, 0.0 }
 0x10b   :  { %v97_v41 = vsel %vm96_vm11, %v74_v40, %v91_v38 }
 0x10c   :  { %v1041_v43 = vpack.c.bf16 %v98_v42, %v97_v41 }
 0x10e   :  { %1042 = vmatpush3.bf16.msra.mxu1 %v1041_v43 }
 0x10f   :  { %987 = vmatprep.subr.mxu1 %v1230_v26 }
 0x112   :  { %988 = vmatpush3.msk.msra.mxu1 %vm96_vm11, %v89_v46 }
 0x113   :  { %990 = vmatmul.mubr.msk.f32.vlgmr.msra.gmra.mrb[0].mxu1 %vm106_vm13, %v99_v45  ;;  %1077 = vmatprep.subr.bf16.mxu1 %v1229_v24 }
 0x11a   :  { %v104_v47 = vpop.permute.xlu1 %103  ;;  %v193_v53 = vpop.permute.xlu0 %192 }
 0x11e   :  { %v198_v48 = vpop.permute.xlu1 %197 }
 0x11f   :  { %v208_v56 = vpop.permute.xlu0 %207 }
 0x123   :  { %v204_v50 = vpop.permute.xlu1 %203 }
 0x124   :  { %v226_v3 = vpop.permute.xlu0 %225 }
 0x128   :  { %v216_v54 = vpop.permute.xlu1 %215 }
 0x12c   :  { %v220_v60 = vpop.permute.xlu1 %219 }
 0x131   :  { %v230_v6 = vpop.permute.xlu1 %229 }
 0x1e6   :  { %v179_v49 = vpop.f32.mrb[0].mxu1 }
 0x1e7   :  { %v180_v51 = vadd.f32 %v179_v49, %v104_v47  ;;  %v991_v52 = vpop.f32.mrb[1].mxu1 }
 0x1e9   :  { %184 = vst.msk [vmem:[#allocation2 + $0x4] sm:$0xff] %vm183_vm14, %v180_v51 }
 0x1f0   :  { %v1321_v55 = vld [vmem:[#allocation2] sm:$0xff]  ;;  %v189_v57 = vld [vmem:[#allocation2 + $0x8] sm:$0xf] }
 0x1f1   :  { %v200_v58 = vmul.f32 %v193_v53, %v1321_v55  ;;  %v201_v59 = vmul.f32 %v198_v48, %v189_v57  ;;  %v918_v57 = vld [vmem:[%s1594_s2 + $0x10] sm:$0xff] }
 0x1f3   :  { %v210_v61 = vadd.f32 %v204_v50, %v200_v58  ;;  %v211_v62 = vadd.f32 %v208_v56, %v201_v59 }
 0x1f5   :  { %v212_v63 = vmax.f32 %v210_v61, 0.0  ;;  %v213_v1 = vmax.f32 %v211_v62, 0.0 }
 0x1f7   :  { %v222_v7 = vmul.f32 %v216_v54, %v212_v63  ;;  %v223_v8 = vmul.f32 %v220_v60, %v213_v1 }
 0x1f9   :  { %v232_v9 = vadd.f32 %v226_v3, %v222_v7  ;;  %v233_v10 = vadd.f32 %v230_v6, %v223_v8 }
 0x1fb   :  { %v234_v11 = vmax.f32 %v232_v9, 0.0  ;;  %v235_v12 = vmax.f32 %v233_v10, 0.0 }
 0x1fd   :  { %v1325_v13 = vmul.f32 %v1281_v27, %v234_v11  ;;  %v1328_v14 = vmul.f32 %v1281_v27, %v235_v12 }
 0x1ff   :  { %248 = vrot.lane.b32.xlu1 %v1325_v13, %s1233_s19  ;;  %v1133_v15 = vpack.i.bf16 %v1325_v13, %v1328_v14  ;;  %v1138_v16 = vpack.i.bf16 %v1328_v14, %v1325_v13 }
 0x201   :  { %1134 = vrot.lane.b32.xlu0 %v1133_v15, %s1235_s21 }
 0x203   :  { %250 = vrot.lane.b32.xlu1 %v1328_v14, %s1233_s19 }
 0x205   :  { %1139 = vrot.lane.b32.xlu0 %v1138_v16, %s1232_s0 }
 0x207   :  { %1144 = vrot.lane.b32.xlu1 %v1133_v15, %s1234_s20 }
 0x209   :  { %294 = vperm.xlu0 %1148, %v919_v20  }
 0x20b   :  { %384 = vperm.xlu1 %1149, %v925_v17  }
 0x20d   :  { %394 = vperm.xlu0 %1148, %v927_v19  }
 0x20f   :  { %389 = vperm.xlu1 %1149, %v926_v18  }
 0x211   :  { %1151 = vset.pattern.permute.xlu0 %v1227_v4 }
 0x212   :  { %405 = vperm.xlu0 %1151, %v926_v18  }
 0x213   :  { %1150 = vset.pattern.permute.xlu1 %v1227_v4 }
 0x214   :  { %401 = vperm.xlu1 %1150, %v925_v17  }
 0x216   :  { %1153 = vset.pattern.permute.xlu0 %v1226_v2 }
 0x217   :  { %423 = vperm.xlu0 %1153, %v926_v18  }
 0x218   :  { %409 = vperm.xlu1 %1150, %v927_v19  }
 0x21b   :  { %1155 = vset.pattern.permute.xlu0 %v1228_v5 }
 0x21c   :  { %1152 = vset.pattern.permute.xlu1 %v1226_v2  ;;  %438 = vperm.xlu0 %1155, %v926_v18  }
 0x21d   :  { %419 = vperm.xlu1 %1152, %v925_v17  }
 0x220   :  { %1177 = vset.pattern.permute.xlu0 %v1225_v0 }
 0x221   :  { %427 = vperm.xlu1 %1152, %v927_v19  }
 0x225   :  { %1154 = vset.pattern.permute.xlu1 %v1228_v5 }
 0x226   :  { %434 = vperm.xlu1 %1154, %v925_v17  }
 0x22a   :  { %442 = vperm.xlu1 %1154, %v927_v19  }
 0x22e   :  { %1176 = vset.pattern.permute.xlu1 %v1225_v0 }
 0x271   :  { %v249_v21 = vpop.permute.xlu1 %248 }
 0x272   :  { %v254_v22 = vsel %vm78_vm9, 0.0, %v249_v21 }
 0x273   :  { %v1135_v23 = vpop.permute.xlu0 %1134  ;;  %v274_v29 = vrot.slane %v254_v22, 4 }
 0x274   :  { %v1136_v25 = vunpack.i.l.bf16 %v1135_v23  ;;  %v1137_v31 = vunpack.i.h.bf16 %v1135_v23 }
 0x275   :  { %v251_v30 = vpop.permute.xlu1 %250 }
 0x276   :  { %v247_v32 = vsel %vm73_vm10, 0.0, %v1136_v25  ;;  %v255_v33 = vsel %vm78_vm9, 0.0, %v251_v30 }
 0x277   :  { %v286_v34 = vsel %vm96_vm11, %v247_v32, %v274_v29  ;;  %v275_v35 = vrot.slane %v255_v33, 4  ;;  %v1140_v36 = vpop.permute.xlu0 %1139 }
 0x278   :  { %v1044_v38 = vpack.c.bf16 %v286_v34, %v1137_v31  ;;  %v1142_v39 = vunpack.i.h.bf16 %v1140_v36  ;;  %v1141_v40 = vunpack.i.l.bf16 %v1140_v36 }
 0x279   :  { %v276_v41 = vsel %vm96_vm11, %v274_v29, %v275_v35  ;;  %v1145_v44 = vpop.permute.xlu1 %1144 }
 0x27a   :  { %v263_v42 = vsel %vm83_vm8, %v1142_v39, 0.0  ;;  %v262_v43 = vsel %vm83_vm8, %v1141_v40, 0.0  ;;  %1046 = vmatpush3.bf16.msk.msra.mxu0 %vm1372_vm1, %v1044_v38  ;;  %v1048_v47 = vpack.c.bf16 %v1325_v13, %v276_v41  ;;  %v1146_v48 = vunpack.i.l.bf16 %v1145_v44 }
 0x27b   :  { %v282_v45 = vrot.slane %v263_v42, 4  ;;  %v281_v46 = vrot.slane %v262_v43, 4  ;;  %1047 = vmatprep.subr.bf16.mxu0 %v1229_v24  ;;  %v1147_v51 = vunpack.i.h.bf16 %v1145_v44  ;;  %v938_v44 = vld [vmem:[%s1591_s1 + $0x60] sm:$0xff] }
 0x27c   :  { %v271_v53 = vsel %vm88_vm12, %v1146_v48, 0.0  ;;  %v940_v48 = vld [vmem:[%s1591_s1 + $0x70] sm:$0xff] }
 0x27d   :  { %v283_v49 = vsel %vm96_vm11, %v281_v46, %v282_v45  ;;  %v287_v50 = vsel %vm96_vm11, %v1328_v14, %v281_v46  ;;  %v1054_v56 = vpack.c.bf16 %v271_v53, %v1147_v51  ;;  %v929_v45 = vld [vmem:[%s1593_s3 + $0x10] sm:$0xff]  ;;  %v939_v46 = vld [vmem:[%s1591_s1 + $0x68] sm:$0xff] }
 0x27e   :  { %1049 = vmatpush3.bf16.msra.mxu0 %v1048_v47  ;;  %v1051_v52 = vpack.c.bf16 %v283_v49, %v287_v50  ;;  %v941_v47 = vld [vmem:[%s1591_s1 + $0x78] sm:$0xf] }
 0x27f   :  { %1050 = vmatprep.subr.bf16.mxu0 %v1229_v24 }
 0x282   :  { %1052 = vmatpush3.bf16.msra.mxu0 %v1051_v52 }
 0x283   :  { %1053 = vmatprep.subr.bf16.mxu0 %v1229_v24 }
 0x286   :  { %1056 = vmatpush3.bf16.msk.msra.mxu0 %vm1391_vm2, %v1054_v56 }
 0x287   :  { %1057 = vmatprep.subr.bf16.mxu0 %v1229_v24 }
 0x288   :  { %v295_v62 = vpop.permute.xlu0 %294 }
 0x289   :  { %1009 = vmatmul.mubr.msk.f32.vlgmr.msra.gmra.mrb[0].mxu0 %vm297_vm3, %v918_v57 }
 0x28a   :  { %1037 = vmatprep.mubr.msk.f32.mxu0 %vm1231_vm7, %v1230_v26  ;;  %v385_v58 = vpop.permute.xlu1 %384  ;;  %vm831_vm7 = vcmask 97280  }
 0x28b   :  { %v397_v9 = vmul.f32 %v385_v58, %v1321_v55 }
 0x28c   :  { %v395_v1 = vpop.permute.xlu0 %394 }
 0x28e   :  { %v390_v59 = vpop.permute.xlu1 %389 }
 0x291   :  { %v406_v8 = vpop.permute.xlu0 %405 }
 0x293   :  { %v402_v60 = vpop.permute.xlu1 %401 }
 0x294   :  { %v412_v11 = vadd.f32 %v402_v60, %v397_v9 }
 0x296   :  { %v424_v13 = vpop.permute.xlu0 %423  ;;  %v415_v15 = vmax.f32 %v412_v11, 0.0 }
 0x297   :  { %v410_v61 = vpop.permute.xlu1 %409 }
 0x29b   :  { %v439_v29 = vpop.permute.xlu0 %438 }
 0x29c   :  { %v420_v63 = vpop.permute.xlu1 %419 }
 0x29d   :  { %v430_v19 = vmul.f32 %v420_v63, %v415_v15 }
 0x2a0   :  { %v428_v10 = vpop.permute.xlu1 %427 }
 0x2a5   :  { %v435_v18 = vpop.permute.xlu1 %434 }
 0x2a6   :  { %v445_v22 = vadd.f32 %v435_v18, %v430_v19 }
 0x2a8   :  { %v448_v33 = vmax.f32 %v445_v22, 0.0 }
 0x2a9   :  { %v443_v32 = vpop.permute.xlu1 %442 }
 0x2aa   :  { %v1409_v38 = vmul.f32 %v1281_v27, %v448_v33 }
 0x35c   :  { %v370_v3 = vpop.f32.mrb[0].mxu0 }
 0x35d   :  { %v371_v6 = vadd.f32 %v370_v3, %v295_v62  ;;  %v1010_v7 = vpop.f32.mrb[1].mxu0 }
 0x35f   :  { %374 = vst.msk [vmem:[#allocation2 + $0xc] sm:$0xff] %vm183_vm14, %v371_v6 }
 0x366   :  { %v1405_v12 = vld [vmem:[#allocation2 + $0x8] sm:$0xff]  ;;  %v381_v14 = vld [vmem:[#allocation2 + $0x10] sm:$0xf] }
 0x367   :  { %v398_v16 = vmul.f32 %v390_v59, %v1405_v12  ;;  %v399_v17 = vmul.f32 %v395_v1, %v381_v14 }
 0x369   :  { %v413_v20 = vadd.f32 %v406_v8, %v398_v16  ;;  %v414_v21 = vadd.f32 %v410_v61, %v399_v17 }
 0x36b   :  { %v416_v23 = vmax.f32 %v413_v20, 0.0  ;;  %v417_v25 = vmax.f32 %v414_v21, 0.0 }
 0x36d   :  { %v431_v30 = vmul.f32 %v424_v13, %v416_v23  ;;  %v432_v31 = vmul.f32 %v428_v10, %v417_v25 }
 0x36f   :  { %v446_v34 = vadd.f32 %v439_v29, %v431_v30  ;;  %v447_v36 = vadd.f32 %v443_v32, %v432_v31 }
 0x371   :  { %v449_v35 = vmax.f32 %v446_v34, 0.0  ;;  %v450_v40 = vmax.f32 %v447_v36, 0.0  ;;  %v928_v34 = vld [vmem:[%s1594_s2 + $0x20] sm:$0xff] }
 0x373   :  { %v1412_v39 = vmul.f32 %v1281_v27, %v449_v35  ;;  %v1419_v42 = vmul.f32 %v1281_v27, %v450_v40 }
 0x375   :  { %v1161_v41 = vpack.i.bf16 %v1412_v39, %v1409_v38  ;;  %v1166_v43 = vpack.i.bf16 %v1419_v42, %v1412_v39 }
 0x377   :  { %1162 = vrot.lane.b32.xlu0 %v1161_v41, %s1233_s19  ;;  %1157 = vrot.lane.b32.xlu1 %v1161_v41, %s1235_s21 }
 0x37b   :  { %473 = vrot.lane.b32.xlu0 %v1419_v42, %s1233_s19  ;;  %461 = vrot.lane.b32.xlu1 %v1419_v42, %s1235_s21 }
 0x37f   :  { %1167 = vrot.lane.b32.xlu0 %v1166_v43, %s1232_s0  ;;  %481 = vrot.lane.b32.xlu1 %v1409_v38, %s1232_s0 }
 0x383   :  { %497 = vrot.lane.b32.xlu0 %v1419_v42, %s1234_s20  ;;  %1172 = vrot.lane.b32.xlu1 %v1161_v41, %s1234_s20 }
 0x387   :  { %627 = vperm.xlu0 %1177, %v938_v44   ;;  %535 = vperm.xlu1 %1176, %v929_v45  }
 0x38b   :  { %1178 = vset.pattern.permute.xlu0 %v1227_v4  ;;  %632 = vperm.xlu1 %1176, %v939_v46  }
 0x38c   :  { %650 = vperm.xlu0 %1178, %v938_v44  }
 0x38f   :  { %642 = vperm.xlu1 %1176, %v941_v47  }
 0x390   :  { %662 = vperm.xlu0 %1178, %v941_v47  }
 0x393   :  { %1179 = vset.pattern.permute.xlu1 %v1227_v4 }
 0x394   :  { %1182 = vset.pattern.permute.xlu0 %v1226_v2  ;;  %654 = vperm.xlu1 %1179, %v939_v46  }
 0x395   :  { %674 = vperm.xlu0 %1182, %v938_v44  }
 0x398   :  { %1180 = vset.pattern.permute.xlu1 %v1225_v0 }
 0x399   :  { %1184 = vset.pattern.permute.xlu0 %v1228_v5  ;;  %637 = vperm.xlu1 %1180, %v940_v48  }
 0x39a   :  { %694 = vperm.xlu0 %1184, %v938_v44  }
 0x39d   :  { %1181 = vset.pattern.permute.xlu1 %v1227_v4 }
 0x39e   :  { %658 = vperm.xlu1 %1181, %v940_v48   ;;  %706 = vperm.xlu0 %1184, %v941_v47  }
 0x3a2   :  { %1183 = vset.pattern.permute.xlu1 %v1226_v2  ;;  %1224 = vset.pattern.permute.xlu0 %v1225_v0 }
 0x3a3   :  { %678 = vperm.xlu1 %1183, %v939_v46  }
 0x3a7   :  { %686 = vperm.xlu1 %1183, %v941_v47  }
 0x3ab   :  { %1185 = vset.pattern.permute.xlu1 %v1228_v5 }
 0x3ac   :  { %698 = vperm.xlu1 %1185, %v939_v46  }
 0x3b0   :  { %1186 = vset.pattern.permute.xlu1 %v1226_v2 }
 0x3b1   :  { %682 = vperm.xlu1 %1186, %v940_v48  }
 0x3b5   :  { %1187 = vset.pattern.permute.xlu1 %v1228_v5 }
 0x3b6   :  { %702 = vperm.xlu1 %1187, %v940_v48  }
 0x3ba   :  { %1223 = vset.pattern.permute.xlu1 %v1225_v0 }
 0x3e9   :  { %v1163_v4 = vpop.permute.xlu0 %1162  ;;  %v1158_v49 = vpop.permute.xlu1 %1157 }
 0x3ea   :  { %v1165_v50 = vunpack.i.h.bf16 %v1163_v4  ;;  %v1164_v51 = vunpack.i.l.bf16 %v1163_v4  ;;  %v1160_v52 = vunpack.i.h.bf16 %v1158_v49  ;;  %v1159_v53 = vunpack.i.l.bf16 %v1158_v49 }
 0x3ec   :  { %v479_v56 = vsel %vm78_vm9, 0.0, %v1165_v50  ;;  %v478_v2 = vsel %vm78_vm9, 0.0, %v1164_v51  ;;  %v1058_v57 = vpack.c.bf16 %v1160_v52, %v1159_v53 }
 0x3ed   :  { %v509_v58 = vrot.slane %v479_v56, 4  ;;  %v508_v5 = vrot.slane %v478_v2, 4  ;;  %v474_v59 = vpop.permute.xlu0 %473  ;;  %v462_v60 = vpop.permute.xlu1 %461 }
 0x3ee   :  { %v480_v0 = vsel %vm78_vm9, 0.0, %v474_v59  ;;  %v468_v61 = vsel %vm73_vm10, 0.0, %v462_v60  ;;  %1060 = vmatpush3.bf16.msk.msra.mxu0 %vm1059_vm4, %v1058_v57 }
 0x3ef   :  { %v511_v62 = vrot.slane %v480_v0, 4  ;;  %v510_v63 = vsel %vm96_vm11, %v508_v5, %v509_v58  ;;  %v527_v1 = vsel %vm96_vm11, %v468_v61, %v508_v5  ;;  %1061 = vmatprep.subr.bf16.mxu0 %v1229_v24 }
 0x3f0   :  { %v1062_v3 = vpack.c.bf16 %v510_v63, %v527_v1 }
 0x3f1   :  { %v512_v6 = vsel %vm96_vm11, %v509_v58, %v511_v62  ;;  %v1168_v7 = vpop.permute.xlu0 %1167  ;;  %v482_v8 = vpop.permute.xlu1 %481 }
 0x3f2   :  { %v1170_v9 = vunpack.i.h.bf16 %v1168_v7  ;;  %v1169_v10 = vunpack.i.l.bf16 %v1168_v7  ;;  %v490_v11 = vsel %vm83_vm8, %v482_v8, 0.0  ;;  %1063 = vmatpush3.bf16.msra.mxu0 %v1062_v3  ;;  %v1065_v14 = vpack.c.bf16 %v1409_v38, %v512_v6 }
 0x3f3   :  { %v519_v13 = vrot.slane %v490_v11, 4  ;;  %1064 = vmatprep.subr.bf16.mxu0 %v1229_v24 }
 0x3f4   :  { %v492_v15 = vsel %vm83_vm8, %v1170_v9, 0.0  ;;  %v491_v16 = vsel %vm83_vm8, %v1169_v10, 0.0 }
 0x3f5   :  { %v522_v17 = vrot.slane %v492_v15, 4  ;;  %v520_v18 = vrot.slane %v491_v16, 4  ;;  %v528_v19 = vsel %vm96_vm11, %v1419_v42, %v519_v13  ;;  %v1173_v23 = vpop.permute.xlu1 %1172  ;;  %v498_v33 = vpop.permute.xlu0 %497 }
 0x3f6   :  { %1066 = vmatpush3.bf16.msra.mxu0 %v1065_v14  ;;  %v1068_v20 = vpack.c.bf16 %v528_v19, %v1412_v39  ;;  %v1175_v29 = vunpack.i.h.bf16 %v1173_v23  ;;  %v1174_v30 = vunpack.i.l.bf16 %v1173_v23  ;;  %v504_v35 = vsel %vm88_vm12, %v498_v33, 0.0 }
 0x3f7   :  { %1067 = vmatprep.subr.bf16.mxu0 %v1229_v24  ;;  %v523_v21 = vsel %vm96_vm11, %v520_v18, %v522_v17  ;;  %v521_v22 = vsel %vm96_vm11, %v519_v13, %v520_v18 }
 0x3f8   :  { %v1071_v25 = vpack.c.bf16 %v523_v21, %v521_v22  ;;  %v1074_v32 = vpack.c.bf16 %v1175_v29, %v1174_v30 }
 0x3fa   :  { %1069 = vmatpush3.bf16.msra.mxu0 %v1068_v20 }
 0x3fb   :  { %1070 = vmatprep.subr.bf16.mxu0 %v1229_v24 }
 0x3fe   :  { %1072 = vmatpush3.bf16.msra.mxu0 %v1071_v25 }
 0x3ff   :  { %1073 = vmatprep.subr.bf16.mxu0 %v1229_v24 }
 0x402   :  { %1076 = vmatpush3.bf16.msk.msra.mxu0 %vm1491_vm5, %v1074_v32 }
 0x403   :  { %1035 = vmatprep.subr.mxu0 %v1230_v26 }
 0x406   :  { %v628_v36 = vpop.permute.xlu0 %627  ;;  %v536_v38 = vpop.permute.xlu1 %535  ;;  %1036 = vmatpush3.msk.msra.mxu0 %vm96_vm11, %v504_v35  ;;  %v944_v35 = vld [vmem:[%s1593_s3 + $0x18] sm:$0xff] }
 0x407   :  { %1038 = vmatmul.mubr.msk.f32.vlgmr.msra.gmra.mrb[2].mxu0 %vm538_vm6, %v928_v34  ;;  %v645_v43 = vmul.f32 %v628_v36, %v1321_v55 }
 0x40a   :  { %v633_v39 = vpop.permute.xlu1 %632 }
 0x40b   :  { %v651_v40 = vpop.permute.xlu0 %650  ;;  %v646_v53 = vmul.f32 %v633_v39, %v1405_v12 }
 0x40c   :  { %v665_v44 = vadd.f32 %v651_v40, %v645_v43 }
 0x40e   :  { %v643_v41 = vpop.permute.xlu1 %642  ;;  %v669_v46 = vmax.f32 %v665_v44, 0.0 }
 0x40f   :  { %v663_v42 = vpop.permute.xlu0 %662 }
 0x413   :  { %v655_v26 = vpop.permute.xlu1 %654 }
 0x414   :  { %v675_v45 = vpop.permute.xlu0 %674  ;;  %v666_v55 = vadd.f32 %v655_v26, %v646_v53 }
 0x415   :  { %v689_v47 = vmul.f32 %v675_v45, %v669_v46 }
 0x416   :  { %v670_v57 = vmax.f32 %v666_v55, 0.0 }
 0x418   :  { %v638_v48 = vpop.permute.xlu1 %637 }
 0x419   :  { %v695_v4 = vpop.permute.xlu0 %694 }
 0x41a   :  { %v709_v49 = vadd.f32 %v695_v4, %v689_v47 }
 0x41c   :  { %v713_v50 = vmax.f32 %v709_v49, 0.0 }
 0x41d   :  { %v659_v51 = vpop.permute.xlu1 %658  ;;  %v707_v62 = vpop.permute.xlu0 %706 }
 0x41e   :  { %v1505_v52 = vmul.f32 %v1281_v27, %v713_v50 }
 0x420   :  { %741 = vrot.lane.b32.xlu1 %v1505_v52, %s1233_s19 }
 0x422   :  { %v679_v56 = vpop.permute.xlu1 %678 }
 0x423   :  { %v690_v58 = vmul.f32 %v679_v56, %v670_v57 }
 0x426   :  { %v687_v2 = vpop.permute.xlu1 %686 }
 0x42b   :  { %v699_v5 = vpop.permute.xlu1 %698 }
 0x42c   :  { %v710_v59 = vadd.f32 %v699_v5, %v690_v58 }
 0x42e   :  { %v714_v60 = vmax.f32 %v710_v59, 0.0 }
 0x430   :  { %v1511_v0 = vmul.f32 %v1281_v27, %v714_v60  ;;  %v683_v14 = vpop.permute.xlu1 %682 }
 0x432   :  { %v1188_v61 = vpack.i.bf16 %v1511_v0, %v1505_v52 }
 0x434   :  { %1189 = vrot.lane.b32.xlu0 %v1188_v61, %s1235_s21 }
 0x435   :  { %v703_v20 = vpop.permute.xlu1 %702 }
 0x492   :  { %v742_v36 = vpop.permute.xlu1 %741 }
 0x4a6   :  { %v1190_v63 = vpop.permute.xlu0 %1189 }
 0x4a7   :  { %v1192_v1 = vunpack.i.h.bf16 %v1190_v63  ;;  %v1191_v12 = vunpack.i.l.bf16 %v1190_v63 }
 0x4a9   :  { %v1078_v3 = vpack.c.bf16 %v1192_v1, %v1191_v12 }
 0x4ab   :  { %1080 = vmatpush1.bf16.msk.msra.mxu1 %vm1059_vm4, %v1078_v3 }
 0x4ac   :  { %1081 = vmatprep.subr.bf16.mxu1 %v1229_v24 }
 0x4da   :  { %v611_v6 = vpop.f32.mrb[2].mxu0 }
 0x4db   :  { %v612_v7 = vadd.f32 %v611_v6, %v536_v38  ;;  %v1039_v8 = vpop.f32.mrb[3].mxu0  ;;  %v753_v38 = vsel %vm78_vm9, 0.0, %v742_v36 }
 0x4dc   :  { %v793_v44 = vrot.slane %v753_v38, 4 }
 0x4dd   :  { %615 = vst.msk [vmem:[#allocation2 + $0x14] sm:$0xff] %vm183_vm14, %v612_v7 }
 0x4e4   :  { %v623_v9 = vld [vmem:[#allocation2 + $0x10] sm:$0xff]  ;;  %v624_v10 = vld [vmem:[#allocation2 + $0x18] sm:$0xf] }
 0x4e5   :  { %v647_v11 = vmul.f32 %v638_v48, %v623_v9  ;;  %v648_v13 = vmul.f32 %v643_v41, %v624_v10 }
 0x4e7   :  { %v667_v15 = vadd.f32 %v659_v51, %v647_v11  ;;  %v668_v16 = vadd.f32 %v663_v42, %v648_v13 }
 0x4e9   :  { %v671_v17 = vmax.f32 %v667_v15, 0.0  ;;  %v672_v18 = vmax.f32 %v668_v16, 0.0 }
 0x4eb   :  { %v691_v19 = vmul.f32 %v683_v14, %v671_v17  ;;  %v692_v28 = vmul.f32 %v687_v2, %v672_v18 }
 0x4ed   :  { %v711_v21 = vadd.f32 %v703_v20, %v691_v19  ;;  %v712_v22 = vadd.f32 %v707_v62, %v692_v28 }
 0x4ef   :  { %v715_v23 = vmax.f32 %v711_v21, 0.0  ;;  %v716_v25 = vmax.f32 %v712_v22, 0.0 }
 0x4f1   :  { %v1524_v29 = vmul.f32 %v1281_v27, %v715_v23  ;;  %v1527_v30 = vmul.f32 %v1281_v27, %v716_v25  ;;  %v943_v27 = vld [vmem:[%s1594_s2 + $0x38] sm:$0xff] }
 0x4f2   :  { %955 = vmatprep.mubr.msk.f32.mxu1 %vm831_vm7, %v943_v27 }
 0x4f3   :  { %v1198_v32 = vpack.i.bf16 %v1524_v29, %v1511_v0  ;;  %v1193_v33 = vpack.i.bf16 %v1524_v29, %v1527_v30  ;;  %v1208_v34 = vpack.i.bf16 %v1527_v30, %v1524_v29  ;;  %v1092_v9 = vpack.c.bf16 %v1524_v29, %v1511_v0  ;;  %v942_v29 = vld [vmem:[%s1594_s2 + $0x30] sm:$0xff] }
 0x4f5   :  { %1199 = vrot.lane.b32.xlu1 %v1198_v32, %s1233_s19  ;;  %1194 = vrot.lane.b32.xlu0 %v1193_v33, %s1235_s21 }
 0x4f9   :  { %1204 = vrot.lane.b32.xlu1 %v1188_v61, %s1232_s0  ;;  %747 = vrot.lane.b32.xlu0 %v1527_v30, %s1233_s19 }
 0x4fd   :  { %1214 = vrot.lane.b32.xlu1 %v1188_v61, %s1234_s20  ;;  %1209 = vrot.lane.b32.xlu0 %v1208_v34, %s1232_s0 }
 0x501   :  { %1219 = vrot.lane.b32.xlu0 %v1193_v33, %s1234_s20  ;;  %828 = vperm.xlu1 %1223, %v944_v35  }
 0x567   :  { %v1200_v39 = vpop.permute.xlu1 %1199  ;;  %v1195_v40 = vpop.permute.xlu0 %1194 }
 0x568   :  { %v1202_v41 = vunpack.i.h.bf16 %v1200_v39  ;;  %v1201_v42 = vunpack.i.l.bf16 %v1200_v39  ;;  %v1196_v43 = vunpack.i.l.bf16 %v1195_v40  ;;  %v1197_v46 = vunpack.i.h.bf16 %v1195_v40 }
 0x56a   :  { %v755_v26 = vsel %vm78_vm9, 0.0, %v1202_v41  ;;  %v754_v45 = vsel %vm78_vm9, 0.0, %v1201_v42  ;;  %v740_v47 = vsel %vm73_vm10, 0.0, %v1196_v43 }
 0x56b   :  { %v796_v48 = vrot.slane %v755_v26, 4  ;;  %v794_v4 = vrot.slane %v754_v45, 4  ;;  %v819_v49 = vsel %vm96_vm11, %v740_v47, %v793_v44  ;;  %v1205_v50 = vpop.permute.xlu1 %1204  ;;  %v748_v51 = vpop.permute.xlu0 %747 }
 0x56c   :  { %v1082_v53 = vpack.c.bf16 %v819_v49, %v1197_v46  ;;  %v756_v56 = vsel %vm78_vm9, 0.0, %v748_v51  ;;  %v1207_v58 = vunpack.i.h.bf16 %v1205_v50  ;;  %v1206_v5 = vunpack.i.l.bf16 %v1205_v50 }
 0x56d   :  { %v798_v55 = vrot.slane %v756_v56, 4  ;;  %v795_v2 = vsel %vm96_vm11, %v793_v44, %v794_v4  ;;  %v797_v57 = vsel %vm96_vm11, %v794_v4, %v796_v48 }
 0x56e   :  { %1084 = vmatpush1.bf16.msk.msra.mxu1 %vm1372_vm1, %v1082_v53  ;;  %v1086_v60 = vpack.c.bf16 %v797_v57, %v795_v2  ;;  %v770_v62 = vsel %vm83_vm8, %v1207_v58, 0.0  ;;  %v769_v63 = vsel %vm83_vm8, %v1206_v5, 0.0 }
 0x56f   :  { %v1210_v59 = vpop.permute.xlu0 %1209  ;;  %1085 = vmatprep.subr.bf16.mxu1 %v1229_v24  ;;  %v799_v61 = vsel %vm96_vm11, %v796_v48, %v798_v55  ;;  %v809_v6 = vrot.slane %v770_v62, 4  ;;  %v808_v37 = vrot.slane %v769_v63, 4  ;;  %v1215_v15 = vpop.permute.xlu1 %1214 }
 0x570   :  { %v1212_v1 = vunpack.i.h.bf16 %v1210_v59  ;;  %v1211_v12 = vunpack.i.l.bf16 %v1210_v59  ;;  %v1089_v3 = vpack.c.bf16 %v1505_v52, %v799_v61  ;;  %v1217_v0 = vunpack.i.h.bf16 %v1215_v15 }
 0x571   :  { %v810_v13 = vsel %vm96_vm11, %v808_v37, %v809_v6  ;;  %v820_v14 = vsel %vm96_vm11, %v1527_v30, %v808_v37  ;;  %v1216_v19 = vunpack.i.l.bf16 %v1215_v15 }
 0x572   :  { %1087 = vmatpush1.bf16.msra.mxu1 %v1086_v60  ;;  %v772_v7 = vsel %vm83_vm8, %v1212_v1, 0.0  ;;  %v771_v8 = vsel %vm83_vm8, %v1211_v12, 0.0  ;;  %v1095_v52 = vpack.c.bf16 %v810_v13, %v820_v14 }
 0x573   :  { %1088 = vmatprep.subr.bf16.mxu1 %v1229_v24  ;;  %v813_v10 = vrot.slane %v772_v7, 4  ;;  %v811_v11 = vrot.slane %v771_v8, 4  ;;  %v1220_v18 = vpop.permute.xlu0 %1219  ;;  %v1101_v21 = vpack.c.bf16 %v1217_v0, %v1216_v19 }
 0x574   :  { %v1221_v20 = vunpack.i.l.bf16 %v1220_v18  ;;  %v1222_v22 = vunpack.i.h.bf16 %v1220_v18 }
 0x575   :  { %v812_v16 = vsel %vm96_vm11, %v809_v6, %v811_v11  ;;  %v814_v17 = vsel %vm96_vm11, %v811_v11, %v813_v10 }
 0x576   :  { %1090 = vmatpush1.bf16.msra.mxu1 %v1089_v3  ;;  %v1098_v28 = vpack.c.bf16 %v814_v17, %v812_v16  ;;  %v788_v23 = vsel %vm88_vm12, %v1221_v20, 0.0 }
 0x577   :  { %1091 = vmatprep.subr.bf16.mxu1 %v1229_v24  ;;  %v1105_v25 = vpack.c.bf16 %v788_v23, %v1222_v22 }
 0x57a   :  { %1093 = vmatpush1.bf16.msra.mxu1 %v1092_v9 }
 0x57b   :  { %1094 = vmatprep.subr.bf16.mxu1 %v1229_v24 }
 0x57e   :  { %1096 = vmatpush1.bf16.msra.mxu1 %v1095_v52 }
 0x57f   :  { %1097 = vmatprep.subr.bf16.mxu1 %v1229_v24 }
 0x580   :  { %v829_v30 = vpop.permute.xlu1 %828 }
 0x582   :  { %1099 = vmatpush1.bf16.msra.mxu1 %v1098_v28 }
 0x583   :  { %1100 = vmatprep.subr.bf16.mxu1 %v1229_v24 }
 0x586   :  { %1103 = vmatpush1.bf16.msk.msra.mxu1 %vm1491_vm5, %v1101_v21 }
 0x587   :  { %1104 = vmatprep.subr.bf16.mxu1 %v1229_v24 }
 0x58a   :  { %1107 = vmatpush1.bf16.msk.msra.mxu1 %vm1391_vm2, %v1105_v25 }
 0x58d   :  { %903 = vmatmul.mubr.f32.vlgmr.msra.gmra.mrb[2].mxu1 %v942_v29 }
 0x660   :  { %v904_v32 = vpop.f32.mrb[2].mxu1 }
 0x661   :  { %v905_v33 = vadd.f32 %v904_v32, %v829_v30  ;;  %v906_v34 = vpop.f32.mrb[3].mxu1 }
 0x663   :  { %908 = vst.msk [vmem:[%s1595_s4] sm:$0xff] %vm183_vm14, %v905_v33 }

</bundles_post_ra>
